<compile_context>
chip_gen: v7x
topology: tpu7x:2x2x1
jax: 0.10.0
libtpu: 0.0.40
codegen_flags: <defaults>
</compile_context>

<pallas_src>
import jax
import jax.numpy as jnp
from jax import lax
from jax.experimental import pallas as pl
from jax.experimental.pallas import tpu as pltpu


def _round_up(a, m):
    return (a + m - 1) // m * m


def _gelu_exact(x):
    # torch.nn.GELU() default = exact erf formulation (computed in f32).
    return 0.5 * x * (1.0 + lax.erf(x * (1.0 / jnp.sqrt(2.0).astype(x.dtype))))


def _spk_enc_kernel(x_ref, w1_ref, b1_ref, w2_ref, b2_ref, o_ref):
    # x_ref : (bm, F)      tile of the (padded) batch            (streamed)
    # w1_ref: (F, F)       first-layer weight (in, out)          (resident)
    # b1_ref: (1, F)
    # w2_ref: (F, Ep)      second-layer weight (in, out_padded)  (resident)
    # b2_ref: (1, Ep)
    # o_ref : (bm, Ep)
    h = jnp.dot(x_ref[...], w1_ref[...], preferred_element_type=jnp.float32)
    h = h + b1_ref[...].astype(jnp.float32)
    h = _gelu_exact(h)
    # Dropout(p=0.0) is the identity -> nothing to do.
    y = jnp.dot(h.astype(w2_ref.dtype), w2_ref[...],
                preferred_element_type=jnp.float32)
    y = y + b2_ref[...].astype(jnp.float32)
    o_ref[...] = y.astype(o_ref.dtype)


def speaker_encoding_layer(x, w1, b1, w2, b2, *, block_m=256, use_bf16=False):
    """x: (B, F); w1: (F, F); b1: (F,); w2: (F, E); b2: (E,).

    Weights are (in, out), i.e. transposed relative to torch Linear storage.
    """
    B, F = x.shape
    E = w2.shape[1]
    out_dtype = x.dtype

    # --- lane-dense output: pad E up to a multiple of 128 -------------------
    E_pad = _round_up(max(E, 128), 128)

    # --- row tile: multiple of 8, capped by the (padded) batch; prefer >=2
    #     grid steps when the batch allows (v7x has two TensorCores) ---------
    bm = _round_up(min(block_m, _round_up(B, 8)), 8)
    if _round_up(B, bm) == bm and bm >= 16:
        bm = _round_up(bm // 2, 8)
    B_pad = _round_up(B, bm)

    # --- zero-pad operands (padded rows/cols only produce discarded output) -
    x_p = x if B_pad == B else jnp.zeros((B_pad, F), x.dtype).at[:B, :].set(x)
    w2_p = w2 if E_pad == E else jnp.zeros((F, E_pad), w2.dtype).at[:, :E].set(w2)
    b2_p = b2 if E_pad == E else jnp.zeros((E_pad,), b2.dtype).at[:E].set(b2)

    if use_bf16:
        # bf16 MXU operands, f32 accumulation; bias/GELU stay f32 in-kernel.
        x_p = x_p.astype(jnp.bfloat16)
        w1 = w1.astype(jnp.bfloat16)
        w2_p = w2_p.astype(jnp.bfloat16)

    b1_2d = b1.reshape(1, F).astype(jnp.float32)
    b2_2d = b2_p.reshape(1, E_pad).astype(jnp.float32)

    grid = (B_pad // bm,)
    out = pl.pallas_call(
        _spk_enc_kernel,
        out_shape=jax.ShapeDtypeStruct((B_pad, E_pad), out_dtype),
        grid_spec=pltpu.PrefetchScalarGridSpec(
            num_scalar_prefetch=0,
            grid=grid,
            in_specs=[
                pl.BlockSpec((bm, F), lambda i: (i, 0)),      # x tile (streamed)
                pl.BlockSpec((F, F), lambda i: (0, 0)),       # w1 (resident)
                pl.BlockSpec((1, F), lambda i: (0, 0)),       # b1
                pl.BlockSpec((F, E_pad), lambda i: (0, 0)),   # w2 (resident)
                pl.BlockSpec((1, E_pad), lambda i: (0, 0)),   # b2
            ],
            out_specs=pl.BlockSpec((bm, E_pad), lambda i: (i, 0)),
        ),
        compiler_params=pltpu.CompilerParams(
            dimension_semantics=("parallel",),
            vmem_limit_bytes=64 * 1024 * 1024,
        ),
    )(x_p, w1, b1_2d, w2_p, b2_2d)

    return out[:B, :E]


def reference_forward(x, w1, b1, w2, b2):
    h = x @ w1 + b1
    h = 0.5 * h * (1.0 + lax.erf(h / jnp.sqrt(2.0)))
    return h @ w2 + b2


if __name__ == "__main__":
    # Small shapes consistent with the module (spk_ft_size / spk_emb_size
    # scaled down); batch=9 deliberately non-multiple-of-8 to exercise the
    # row-padding path and a 2-step grid.
    batch = 9
    spk_ft_size = 256
    spk_emb_size = 64

    key = jax.random.PRNGKey(0)
    kx, kw1, kb1, kw2, kb2 = jax.random.split(key, 5)

    x = jax.random.normal(kx, (batch, spk_ft_size), dtype=jnp.float32)
    # torch stores Linear weight as (out, in); we keep (in, out) so the
    # kernel computes x @ W directly.
    w1 = jax.random.normal(kw1, (spk_ft_size, spk_ft_size), dtype=jnp.float32) * 0.02
    b1 = jax.random.normal(kb1, (spk_ft_size,), dtype=jnp.float32) * 0.02
    w2 = jax.random.normal(kw2, (spk_ft_size, spk_emb_size), dtype=jnp.float32) * 0.02
    b2 = jax.random.normal(kb2, (spk_emb_size,), dtype=jnp.float32) * 0.02

    ref = reference_forward(x, w1, b1, w2, b2)

    # f32 path: bit-parity-level match with the reference.
    out = speaker_encoding_layer(x, w1, b1, w2, b2)
    out = jax.block_until_ready(out)
    assert out.shape == (batch, spk_emb_size)
    assert jnp.allclose(out, ref, atol=1e-4, rtol=1e-4), "f32 mismatch vs reference"

    # bf16-operand path (f32 accumulation): looser tolerance by construction.
    out_bf16 = speaker_encoding_layer(x, w1, b1, w2, b2, use_bf16=True)
    out_bf16 = jax.block_until_ready(out_bf16)
    assert out_bf16.shape == (batch, spk_emb_size)
    assert jnp.allclose(out_bf16, ref, atol=2e-2, rtol=2e-2), "bf16 mismatch vs reference"

    print("KERNEL_OK")
</pallas_src>

<mosaic_0001>
module attributes {stable_mosaic.version = 11 : i64} {
  func.func @_spk_enc_kernel(%arg0: i32, %arg1: memref<8x256xf32, #tpu.memory_space<vmem>>, %arg2: memref<256x256xf32, #tpu.memory_space<vmem>>, %arg3: memref<1x256xf32, #tpu.memory_space<vmem>>, %arg4: memref<256x128xf32, #tpu.memory_space<vmem>>, %arg5: memref<1x128xf32, #tpu.memory_space<vmem>>, %arg6: memref<8x128xf32, #tpu.memory_space<vmem>>) attributes {dimension_semantics = [#tpu.dimension_semantics<parallel>], iteration_bounds = array<i64: 2>, scalar_prefetch = 0 : i64, scratch_operands = 0 : i64, tpu.core_type = #tpu.core_type<tc>, window_params = [{transform_indices = @transform_0, window_bounds = array<i64: 8, 256>}, {pipeline_mode = #tpu.pipeline_mode<synchronous>, transform_indices = @transform_1, window_bounds = array<i64: 256, 256>}, {pipeline_mode = #tpu.pipeline_mode<synchronous>, transform_indices = @transform_2, window_bounds = array<i64: 1, 256>}, {pipeline_mode = #tpu.pipeline_mode<synchronous>, transform_indices = @transform_3, window_bounds = array<i64: 256, 128>}, {pipeline_mode = #tpu.pipeline_mode<synchronous>, transform_indices = @transform_4, window_bounds = array<i64: 1, 128>}, {transform_indices = @transform_5, window_bounds = array<i64: 8, 128>}]} {
    %c0 = arith.constant 0 : index
    %c0_0 = arith.constant 0 : index
    %0 = vector.load %arg1[%c0, %c0_0] : memref<8x256xf32, #tpu.memory_space<vmem>>, vector<8x256xf32>
    %c0_1 = arith.constant 0 : index
    %c0_2 = arith.constant 0 : index
    %1 = vector.load %arg2[%c0_1, %c0_2] : memref<256x256xf32, #tpu.memory_space<vmem>>, vector<256x256xf32>
    %cst = arith.constant dense<0.000000e+00> : vector<8x256xf32>
    %2 = tpu.matmul %0, %1, %cst {dimension_numbers = #tpu.dot_dimension_numbers<[1], [0], [0], [1], [0, 0, 1, 1], [], []>} : vector<8x256xf32>, vector<256x256xf32>, vector<8x256xf32> -> vector<8x256xf32>
    %c0_3 = arith.constant 0 : index
    %c0_4 = arith.constant 0 : index
    %3 = vector.load %arg3[%c0_3, %c0_4] : memref<1x256xf32, #tpu.memory_space<vmem>>, vector<1x256xf32>
    %4 = vector.broadcast %3 : vector<1x256xf32> to vector<8x256xf32>
    %5 = arith.addf %2, %4 : vector<8x256xf32>
    %cst_5 = arith.constant 5.000000e-01 : f32
    %6 = vector.broadcast %cst_5 : f32 to vector<8x256xf32>
    %7 = arith.mulf %6, %5 : vector<8x256xf32>
    %cst_6 = arith.constant 2.000000e+00 : f32
    %8 = math.sqrt %cst_6 : f32
    %cst_7 = arith.constant 1.000000e+00 : f32
    %9 = arith.divf %cst_7, %8 : f32
    %10 = vector.broadcast %9 : f32 to vector<8x256xf32>
    %11 = arith.mulf %5, %10 : vector<8x256xf32>
    %12 = math.erf %11 : vector<8x256xf32>
    %cst_8 = arith.constant 1.000000e+00 : f32
    %13 = vector.broadcast %cst_8 : f32 to vector<8x256xf32>
    %14 = arith.addf %13, %12 : vector<8x256xf32>
    %15 = arith.mulf %7, %14 : vector<8x256xf32>
    %c0_9 = arith.constant 0 : index
    %c0_10 = arith.constant 0 : index
    %16 = vector.load %arg4[%c0_9, %c0_10] : memref<256x128xf32, #tpu.memory_space<vmem>>, vector<256x128xf32>
    %cst_11 = arith.constant dense<0.000000e+00> : vector<8x128xf32>
    %17 = tpu.matmul %15, %16, %cst_11 {dimension_numbers = #tpu.dot_dimension_numbers<[1], [0], [0], [1], [0, 0, 1, 1], [], []>} : vector<8x256xf32>, vector<256x128xf32>, vector<8x128xf32> -> vector<8x128xf32>
    %c0_12 = arith.constant 0 : index
    %c0_13 = arith.constant 0 : index
    %18 = vector.load %arg5[%c0_12, %c0_13] : memref<1x128xf32, #tpu.memory_space<vmem>>, vector<1x128xf32>
    %19 = vector.broadcast %18 : vector<1x128xf32> to vector<8x128xf32>
    %20 = arith.addf %17, %19 : vector<8x128xf32>
    %c0_14 = arith.constant 0 : index
    %c0_15 = arith.constant 0 : index
    %21 = vector.load %arg6[%c0_14, %c0_15] : memref<8x128xf32, #tpu.memory_space<vmem>>, vector<8x128xf32>
    tpu.vector_store %arg6[%c0_14, %c0_15], %20 {strides = array<i32>} : memref<8x128xf32, #tpu.memory_space<vmem>>, vector<8x128xf32>,
    return
  }
  func.func @transform_0(%arg0: i32) -> (i32, i32) {
    %c0_i32 = arith.constant 0 : i32
    %c0_i32_0 = arith.constant 0 : i32
    return %arg0, %c0_i32 : i32, i32
  }
  func.func @transform_1(%arg0: i32) -> (i32, i32) {
    %c0_i32 = arith.constant 0 : i32
    %c0_i32_0 = arith.constant 0 : i32
    %c0_i32_1 = arith.constant 0 : i32
    return %c0_i32, %c0_i32_0 : i32, i32
  }
  func.func @transform_2(%arg0: i32) -> (i32, i32) {
    %c0_i32 = arith.constant 0 : i32
    %c0_i32_0 = arith.constant 0 : i32
    %c0_i32_1 = arith.constant 0 : i32
    return %c0_i32, %c0_i32_0 : i32, i32
  }
  func.func @transform_3(%arg0: i32) -> (i32, i32) {
    %c0_i32 = arith.constant 0 : i32
    %c0_i32_0 = arith.constant 0 : i32
    %c0_i32_1 = arith.constant 0 : i32
    return %c0_i32, %c0_i32_0 : i32, i32
  }
  func.func @transform_4(%arg0: i32) -> (i32, i32) {
    %c0_i32 = arith.constant 0 : i32
    %c0_i32_0 = arith.constant 0 : i32
    %c0_i32_1 = arith.constant 0 : i32
    return %c0_i32, %c0_i32_0 : i32, i32
  }
  func.func @transform_5(%arg0: i32) -> (i32, i32) {
    %c0_i32 = arith.constant 0 : i32
    %c0_i32_0 = arith.constant 0 : i32
    return %arg0, %c0_i32 : i32, i32
  }
}

</mosaic_0001>

<bundles_post_ra>
// kernel: tpu_custom_call.1
= control target key start
LH: loop header
LB: loop body
LE: loop exit
PB: predicated region body
PF: predicated region fallthrough
CT: control target
= control target key end

     0   :  { %10 = vsyncpa [#allocation3], 0  ;;  %s1474_s0 = inlined_call_operand.hbm [shape: f32[16,256], index: 0, kind: input, shape index: {}]   ;;  %s1475_s1 = inlined_call_operand.hbm [shape: f32[256,256], index: 1, kind: input, shape index: {}]   ;;  %s1476_s2 = inlined_call_operand.hbm [shape: f32[1,256], index: 2, kind: input, shape index: {}]   ;;  %s1477_s3 = inlined_call_operand.hbm [shape: f32[256,128], index: 3, kind: input, shape index: {}]   ;;  %s1478_s4 = inlined_call_operand.hbm [shape: f32[1,128], index: 4, kind: input, shape index: {}]   ;;  %s1479_s5 = inlined_call_operand.hbm [shape: f32[16,128], index: 5, kind: output, shape index: {}]  }
   0x1   :  { %12 = vsyncpa [#allocation3 + $0x1], 0 }
   0x2   :  { %13 = vsyncpa [#allocation6], 0 }
   0x3   :  { %14 = vsyncpa [#allocation9], 0 }
   0x4   :  { %15 = vsyncpa [#allocation4], 0 }
   0x5   :  { %17 = vsyncpa [#allocation4 + $0x1], 0  ;;  %s1193_s18 = smov 0   ;;  %s1195_s19 = smov 0  }
   0x6   :  { %s1197_s20 = smov 0   ;;  %s1199_s21 = smov 0  }
   0x7 LB: > { %s1153_s22 = smov [#allocation5]   ;;  %s1214_s24 = sadd.s32 4294967295, %s1151_s21   ;;  %s1151_s21 = sphi %s1199_s21, %s1503_s21   ;;  %s1147_s20 = sphi %s1197_s20, %s1502_s20   ;;  %s1143_s19 = sphi %s1195_s19, %s1501_s19   ;;  %s1139_s18 = sphi %s1193_s18, %s1500_s18  }
   0x8   : > { %s176_s23 = sshll.u32 %s1153_s22, 4  ;;  %p687_p0 = scmp.ge.s32.totalorder %s1151_s21, 1  ;;  %s1219_s23 = int_to_ptr.vmem [resolvable:$true] %s176_s23 }
   0x9   : > { %p1480_p1 = scmp.eq.s32.totalorder %s1214_s24, 0  ;;  %p164_p2 = scmp.lt.s32.totalorder %s1151_s21, 3 }
   0xa   : > { %s1154_s26 = smov [#allocation8]   ;;  %s1155_s29 = smov [#allocation7]  }
   0xb   : > { %p1221_p3 = pnand %p687_p0, %p164_p2  ;;  %s200_s27 = sshll.u32 %s1154_s26, 4  ;;  %s1234_s27 = int_to_ptr.vmem [resolvable:$true] %s200_s27 }
   0xc   : > { %s1236_s30 = sshll.u32 %s1155_s29, 4  ;;  %s935_s8 = scalar_lea.hbm %s1475_s1, 8192  ;;  %s191_s30 = int_to_ptr.vmem [resolvable:$true] %s1236_s30 }
   0xd   : > { %s1483_s25 = scalar_select %p1221_p3, 1, 0 }
   0xe   : > { %p860_p5 = pneg %p1221_p3  ;;  %p936_p7 = scmp.ne.s32.totalorder %s1475_s1, %s935_s8 }
   0xf   : > { %p942_p11 = scmp.lt.u32.totalorder %s935_s8, %s1475_s1 }
  0x10   : > { %p1230_p6 = pnand %p860_p5, %p1480_p1 }
  0x12   : > { %p1246_p8 = pneg %p1230_p6 }
  0x14   : > { %p938_p9 = pnand %p1246_p8, %p936_p7 }
  0x16   : > { %p939_p10 = pneg %p938_p9 }
  0x18   : > { %p944_p12 = pnand %p942_p11, %p939_p10 }
  0x1a   : > { %947 = shalt.err (!%p944_p12)
}
  0x1b   : > { %s948_s14 = scalar_lea.vmem %s1219_s23, 8192  ;;  %p956_p5 = scmp.lt.s32.totalorder %s1219_s23, %s1219_s23 }
  0x1c   : > { %p949_p13 = scmp.ne.s32.totalorder %s1219_s23, %s948_s14  ;;  %p957_p4 = scmp.lt.s32.totalorder %s948_s14, %s948_s14 }
  0x1e   : > { %p951_p0 = pnand %p949_p13, %p1246_p8  ;;  %p958_p7 = por %p957_p4, %p956_p5 }
  0x20   : > { %p952_p2 = pneg %p951_p0 }
  0x22   : > { %p959_p9 = pnand %p958_p7, %p952_p2 }
  0x24   : > { %962 = shalt.err (!%p959_p9)
}
  0x25   : > { %s1156_s15 = smov 256   ;;  %s1157_s16 = smov 16  }
  0x26   : > { %863 = dma.hbm_to_vmem [thread:$0]  (!%p1230_p6), %s1475_s1, 8192, %s1219_s23, [#allocation6], %s1156_s15, %s1156_s15, %s1157_s16  }
  0x27   : > { %s963_s6 = scalar_lea.hbm %s1477_s3, 4096 }
  0x28   : > { %p964_p4 = scmp.ne.s32.totalorder %s1477_s3, %s963_s6  ;;  %p970_p12 = scmp.lt.u32.totalorder %s963_s6, %s1477_s3 }
  0x2a   : > { %p966_p10 = pnand %p964_p4, %p1246_p8 }
  0x2c   : > { %p967_p11 = pneg %p966_p10 }
  0x2e   : > { %p972_p13 = pnand %p970_p12, %p967_p11 }
  0x30   : > { %975 = shalt.err (!%p972_p13)
}
  0x31   : > { %s976_s23 = scalar_lea.vmem %s1234_s27, 4096  ;;  %p984_p7 = scmp.lt.s32.totalorder %s1234_s27, %s1234_s27 }
  0x32   : > { %p977_p0 = scmp.ne.s32.totalorder %s1234_s27, %s976_s23  ;;  %p985_p9 = scmp.lt.s32.totalorder %s976_s23, %s976_s23 }
  0x34   : > { %p979_p2 = pnand %p977_p0, %p1246_p8  ;;  %p986_p4 = por %p985_p9, %p984_p7 }
  0x36   : > { %p980_p5 = pneg %p979_p2 }
  0x38   : > { %p987_p10 = pnand %p986_p4, %p980_p5 }
  0x3a   : > { %990 = shalt.err (!%p987_p10)
}
  0x3b   : > { %s1158_s12 = smov 128   ;;  %s1159_s13 = smov 8  }
  0x3c   : > { %869 = dma.hbm_to_vmem [thread:$0]  (!%p1230_p6), %s1477_s3, 4096, %s1234_s27, [#allocation9], %s1158_s12, %s1158_s12, %s1159_s13  }
  0x3d   : > { %s991_s22 = scalar_lea.hbm %s1476_s2, 32 }
  0x3e   : > { %p992_p11 = scmp.ne.s32.totalorder %s1476_s2, %s991_s22  ;;  %p998_p0 = scmp.lt.u32.totalorder %s991_s22, %s1476_s2 }
  0x40   : > { %p994_p12 = pnand %p992_p11, %p1246_p8 }
  0x42   : > { %p995_p13 = pneg %p994_p12 }
  0x44   : > { %p1000_p2 = pnand %p998_p0, %p995_p13 }
  0x46   : > { %1003 = shalt.err (!%p1000_p2)
}
  0x47   : > { %s1004_s8 = scalar_lea.vmem %s191_s30, 32  ;;  %p1012_p4 = scmp.lt.s32.totalorder %s191_s30, %s191_s30 }
  0x48   : > { %p1005_p5 = scmp.ne.s32.totalorder %s191_s30, %s1004_s8  ;;  %p1013_p10 = scmp.lt.s32.totalorder %s1004_s8, %s1004_s8 }
  0x4a   : > { %p1007_p7 = pnand %p1005_p5, %p1246_p8  ;;  %p1014_p1 = por %p1013_p10, %p1012_p4 }
  0x4c   : > { %p1008_p9 = pneg %p1007_p7 }
  0x4e   : > { %p1015_p3 = pnand %p1014_p1, %p1008_p9 }
  0x50   : > { %1018 = shalt.err (!%p1015_p3)
}
  0x51   : > { %866 = dma.hbm_to_vmem [thread:$0]  (!%p1230_p6), %s1476_s2, 32, %s191_s30, [#allocation6]  }
  0x52   : > { %s1160_s10 = smov [#allocation10]   ;;  %s1019_s14 = scalar_lea.hbm %s1478_s4, 16 }
  0x53   : > { %s214_s23 = sshll.u32 %s1160_s10, 4  ;;  %p1020_p11 = scmp.ne.s32.totalorder %s1478_s4, %s1019_s14  ;;  %s215_s23 = int_to_ptr.vmem [resolvable:$true] %s214_s23 }
  0x54   : > { %p1026_p12 = scmp.lt.u32.totalorder %s1019_s14, %s1478_s4 }
  0x55   : > { %p1022_p1 = pnand %p1020_p11, %p1246_p8 }
  0x57   : > { %p1023_p3 = pneg %p1022_p1 }
  0x59   : > { %p1028_p13 = pnand %p1026_p12, %p1023_p3 }
  0x5b   : > { %1031 = shalt.err (!%p1028_p13)
}
  0x5c   : > { %s1032_s30 = scalar_lea.vmem %s215_s23, 16  ;;  %s1039_s26 = scalar_lea.vmem %s215_s23, 32 }
  0x5d   : > { %p1033_p0 = scmp.ne.s32.totalorder %s215_s23, %s1032_s30  ;;  %p1040_p7 = scmp.lt.s32.totalorder %s215_s23, %s215_s23 }
  0x5e   : > { %p1041_p9 = scmp.lt.s32.totalorder %s1039_s26, %s1032_s30 }
  0x5f   : > { %p1035_p2 = pnand %p1033_p0, %p1246_p8 }
  0x60   : > { %p1042_p4 = por %p1041_p9, %p1040_p7 }
  0x61   : > { %p1036_p5 = pneg %p1035_p2 }
  0x63   : > { %p1043_p10 = pnand %p1042_p4, %p1036_p5 }
  0x65   : > { %1046 = shalt.err (!%p1043_p10)
}
  0x66   : > { %872 = dma.hbm_to_vmem [thread:$0]  (!%p1230_p6), %s1478_s4, 16, %s215_s23, [#allocation9]  }
  0x67   : > { %s686_s11 = sadd.s32 4294967294, %s1151_s21   ;;  %s1329_s28 = sadd.s32 1, %s1151_s21  }
  0x68   : > { %s27_s7 = ssub.s32 %s1151_s21, %s1329_s28  ;;  %s30_s8 = sadd.s32 1, %s1147_s20 }
  0x69   : > { %p28_p8 = scmp.eq.s32.totalorder %s27_s7, 0  ;;  %p37_p11 = scmp.ne.s32.totalorder %s1147_s20, %s1143_s19 }
  0x6a   : > { %p38_p1 = scmp.eq.s32.totalorder %s1151_s21, 0  ;;  %p43_p3 = scmp.ne.s32.totalorder %s1143_s19, %s1139_s18 }
  0x6b   : > { %s1340_s27 = scalar_select %p28_p8, %s1147_s20, %s30_s8  }
  0x6c   : > { %p1342_p12 = por %p38_p1, %p37_p11  ;;  %p1487_p13 = scmp.eq.s32.totalorder %s1214_s24, 0 }
  0x6d   : > { %p151_p0 = scmp.eq.s32.totalorder %s1214_s24, 1  ;;  %p157_p2 = scmp.eq.s32.totalorder %s686_s11, 1 }
  0x6e   : > { %p1348_p6 = por %p1487_p13, %p43_p3  ;;  %p885_p5 = scmp.lt.s32.totalorder %s1151_s21, 2 }
  0x6f   : > { %s225_s23 = sand.u32 1, %s1147_s20   ;;  %p1355_p7 = por %p151_p0, %p37_p11 }
  0x70   : > { %p1359_p9 = por %p157_p2, %p43_p3  ;;  %s693_s14 = sshll.u32 %s225_s23, 4 }
  0x71   : > { %s1489_s12 = scalar_select %p1355_p7, 1, 0 }
  0x72   : > { %s1490_s13 = scalar_select %p1359_p9, 1, 0 }
  0x73   : > { %s708_s15 = sshll.u32 %s1151_s21, 8  ;;  %s229_s30 = scalar_lea.vmem [#allocation2], %s693_s14 }
  0x74   : > { %s1367_s22 = scalar_lea.hbm %s1474_s0, %s708_s15  ;;  %s237_s26 = sshll.u32 %s229_s30, 4  ;;  %s1369_s26 = int_to_ptr.vmem [resolvable:$true] %s237_s26 }
  0x75   : > { %p1373_p4 = pnand %p885_p5, %p1342_p12  ;;  %s226_s6 = scalar_lea.sflag [#allocation3], %s225_s23 }
  0x76   : > { %s1047_s11 = scalar_lea.hbm %s1367_s22, 256  ;;  %s1052_s14 = scalar_lea.hbm %s1474_s0, 512 }
  0x77   : > { %p1048_p10 = scmp.ne.s32.totalorder %s1367_s22, %s1047_s11  ;;  %p1049_p8 = pneg %p1373_p4 }
  0x78   : > { %p1053_p3 = scmp.lt.u32.totalorder %s1367_s22, %s1474_s0  ;;  %p1054_p12 = scmp.lt.u32.totalorder %s1052_s14, %s1047_s11 }
  0x79   : > { %p1050_p11 = pnand %p1049_p8, %p1048_p10  ;;  %p1056_p0 = scmp.lt.u32.totalorder %s1047_s11, %s1367_s22 }
  0x7a   : > { %p1055_p13 = por %p1054_p12, %p1053_p3 }
  0x7b   : > { %p1051_p1 = pneg %p1050_p11 }
  0x7c   : > { %p1057_p2 = por %p1056_p0, %p1055_p13 }
  0x7e   : > { %p1058_p5 = pnand %p1057_p2, %p1051_p1 }
  0x80   : > { %1061 = shalt.err (!%p1058_p5)
}
  0x81   : > { %s1062_s23 = scalar_lea.vmem %s1369_s26, 256  ;;  %s1161_s16 = smov [#allocation2]  }
  0x82   : > { %p1063_p10 = scmp.ne.s32.totalorder %s1369_s26, %s1062_s23  ;;  %s1067_s17 = sshll.u32 %s1161_s16, 4  ;;  %s1068_s17 = int_to_ptr.vmem [resolvable:$false] %s1067_s17 }
  0x83   : > { %s1069_s30 = scalar_lea.vmem %s1068_s17, 512  ;;  %p1070_p7 = scmp.lt.s32.totalorder %s1369_s26, %s1068_s17 }
  0x84   : > { %p1065_p11 = pnand %p1063_p10, %p1049_p8  ;;  %p1071_p3 = scmp.lt.s32.totalorder %s1069_s30, %s1062_s23 }
  0x86   : > { %p1066_p9 = pneg %p1065_p11  ;;  %p1072_p12 = por %p1071_p3, %p1070_p7 }
  0x88   : > { %p1073_p13 = pnand %p1072_p12, %p1066_p9 }
  0x8a   : > { %1076 = shalt.err (!%p1073_p13)
}
  0x8b   : > { %876 = dma.hbm_to_vmem [thread:$0]  (!%p1373_p4), %s1367_s22, 256, %s1369_s26, %s226_s6  }
  0x8c   : > { %p1492_p1 = scmp.ne.s32.totalorder %s1483_s25, 0 }
  0x8d   : > { %s1405_s11 = sand.u32 (!%p1492_p1), 1, %s1143_s19  }
  0x8e   : > { %246 = sbr.rel (%p1492_p1) target bundleno = 687 (0x2af), region = 40  ;;  %s697_s7 = sshll.u32 (!%p1492_p1), %s1405_s11, 4 }
  0x8f   : > { %s249_s8 = scalar_lea.sflag (!%p1492_p1), [#allocation3], %s1405_s11  ;;  %s1409_s14 = scalar_lea.vmem (!%p1492_p1), [#allocation2], %s697_s7 }
  0x95   : > { %1122 = dma.done.wait (%p1348_p6), %s249_s8, 256  }
  0x96   : > { %1124 = vsyncadd (%p1348_p6), %s249_s8, 4294967040  ;;  %p1493_p7 = scmp.eq.s32.totalorder %s1214_s24, 0 }
  0x98   : > { %1126 = dma.done.wait (%p1493_p7), [#allocation6], 8224   ;;  %p1494_p9 = pmov %p1493_p7 }
  0x99   : > { %p1495_p4 = pmov %p1493_p7 }
  0x9a   : > { %1128 = vsyncadd (%p1494_p9), [#allocation6], 4294959072 }
  0x9b   : > { %1130 = dma.done.wait (%p1495_p4), [#allocation9], 4112   ;;  %p1496_p8 = pmov %p1495_p4 }
  0x9c   : > { %v298_v0 = vld [vmem:[#allocation5 + $0x8] sm:$0xff]  ;;  %v300_v1 = vld [vmem:[#allocation5 + $0x18] sm:$0xff]  ;;  %v297_v2 = vld [vmem:[#allocation5] sm:$0xff]  ;;  %s702_s25 = sshll.u32 %s1405_s11, 3  ;;  %s705_s10 = sshll.u32 %s1214_s24, 7 }
  0x9d   : > { %1132 = vsyncadd (%p1496_p8), [#allocation9], 4294963184  ;;  %v744_v3 = vpack.c.bf16 %v300_v1, %v298_v0  ;;  %v299_v4 = vld [vmem:[#allocation5 + $0x10] sm:$0xff]  ;;  %v302_v5 = vld [vmem:[#allocation5 + $0x28] sm:$0xff]  ;;  %s294_s22 = scalar_lea.vmem [#allocation11], %s702_s25  ;;  %s1430_s9 = scalar_lea.hbm %s1479_s5, %s705_s10 }
  0x9e   : > { %v304_v6 = vld [vmem:[#allocation5 + $0x38] sm:$0xff]  ;;  %v746_v7 = vpack.c.bf16 %v299_v4, %v297_v2  ;;  %v301_v9 = vld [vmem:[#allocation5 + $0x20] sm:$0xff]  ;;  %v303_v10 = vld [vmem:[#allocation5 + $0x30] sm:$0xff]  ;;  %s578_s26 = sshll.u32 %s294_s22, 4  ;;  %s565_s15 = scalar_lea.sflag [#allocation4], %s1405_s11  ;;  %s1432_s26 = int_to_ptr.vmem [resolvable:$true] %s578_s26 }
  0x9f   : > { %v748_v8 = vpack.c.bf16 %v304_v6, %v302_v5  ;;  %v306_v11 = vld [vmem:[#allocation5 + $0x48] sm:$0xff]  ;;  %745 = vmatprep.subr.bf16.mxu0 %v744_v3  ;;  %v308_v12 = vld [vmem:[#allocation5 + $0x58] sm:$0xff]  ;;  %v750_v13 = vpack.c.bf16 %v303_v10, %v301_v9  ;;  %v305_v15 = vld [vmem:[#allocation5 + $0x40] sm:$0xff]  ;;  %s1077_s23 = scalar_lea.vmem %s1432_s26, 128  ;;  %p1497_p0 = scmp.ne.s32.totalorder %s1489_s12, 0 }
  0xa0   : > { %747 = vmatpush1.bf16.msra.mxu0 %v746_v7  ;;  %v752_v14 = vpack.c.bf16 %v308_v12, %v306_v11  ;;  %v307_v16 = vld [vmem:[#allocation5 + $0x50] sm:$0xff]  ;;  %v310_v17 = vld [vmem:[#allocation5 + $0x68] sm:$0xff]  ;;  %v312_v18 = vld [vmem:[#allocation5 + $0x78] sm:$0xff]  ;;  %p1078_p6 = scmp.ne.s32.totalorder %s1432_s26, %s1077_s23  ;;  %s1162_s24 = smov [#allocation11]  }
  0xa1   : > { %749 = vmatprep.subr.bf16.mxu0 %v748_v8  ;;  %v754_v19 = vpack.c.bf16 %v307_v16, %v305_v15  ;;  %v756_v20 = vpack.c.bf16 %v312_v18, %v310_v17  ;;  %v309_v21 = vld [vmem:[#allocation5 + $0x60] sm:$0xff]  ;;  %v311_v22 = vld [vmem:[#allocation5 + $0x70] sm:$0xff]  ;;  %v314_v23 = vld [vmem:[#allocation5 + $0x88] sm:$0xff]  ;;  %s1081_s16 = sshll.u32 %s1162_s24, 4  ;;  %s1082_s16 = int_to_ptr.vmem [resolvable:$false] %s1081_s16 }
  0xa2   : > { %v316_v24 = vld [vmem:[#allocation5 + $0x98] sm:$0xff]  ;;  %v758_v25 = vpack.c.bf16 %v311_v22, %v309_v21  ;;  %v313_v27 = vld [vmem:[#allocation5 + $0x80] sm:$0xff]  ;;  %v315_v28 = vld [vmem:[#allocation5 + $0x90] sm:$0xff]  ;;  %p1079_p2 = pnand %p1078_p6, %p1497_p0  ;;  %s1083_s17 = scalar_lea.vmem %s1082_s16, 256 }
  0xa3   : > { %v760_v26 = vpack.c.bf16 %v316_v24, %v314_v23  ;;  %v318_v29 = vld [vmem:[#allocation5 + $0xa8] sm:$0xff]  ;;  %v320_v30 = vld [vmem:[#allocation5 + $0xb8] sm:$0xff]  ;;  %v762_v31 = vpack.c.bf16 %v315_v28, %v313_v27  ;;  %v317_v33 = vld [vmem:[#allocation5 + $0xa0] sm:$0xff]  ;;  %p1084_p10 = scmp.lt.s32.totalorder %s1432_s26, %s1082_s16  ;;  %p1085_p11 = scmp.lt.s32.totalorder %s1083_s17, %s1077_s23 }
  0xa4   : > { %751 = vmatpush1.bf16.msra.mxu0 %v750_v13  ;;  %v764_v32 = vpack.c.bf16 %v320_v30, %v318_v29  ;;  %v319_v34 = vld [vmem:[#allocation5 + $0xb0] sm:$0xff]  ;;  %v322_v35 = vld [vmem:[#allocation5 + $0xc8] sm:$0xff]  ;;  %v324_v36 = vld [vmem:[#allocation5 + $0xd8] sm:$0xff]  ;;  %p1080_p5 = pneg %p1079_p2 }
  0xa5   : > { %753 = vmatprep.subr.bf16.mxu0 %v752_v14  ;;  %v766_v37 = vpack.c.bf16 %v319_v34, %v317_v33  ;;  %v321_v38 = vld [vmem:[#allocation5 + $0xc0] sm:$0xff]  ;;  %v323_v39 = vld [vmem:[#allocation5 + $0xd0] sm:$0xff]  ;;  %v768_v40 = vpack.c.bf16 %v324_v36, %v322_v35  ;;  %v326_v41 = vld [vmem:[#allocation5 + $0xe8] sm:$0xff]  ;;  %p1086_p3 = por %p1085_p11, %p1084_p10 }
  0xa6   : > { %v328_v42 = vld [vmem:[#allocation5 + $0xf8] sm:$0xff]  ;;  %v470_v44 = vld [vmem:[#allocation8 + $0x80] sm:$0xff]  ;;  %v471_v45 = vld [vmem:[#allocation8 + $0x88] sm:$0xff]  ;;  %v770_v51 = vpack.c.bf16 %v323_v39, %v321_v38 }
  0xa7   : > { %v296_v43 = vld [vmem:[%s1409_s14 + $0x8] sm:$0xff]  ;;  %v808_v47 = vpack.c.bf16 %v471_v45, %v470_v44  ;;  %v772_v57 = vpack.c.bf16 %v328_v42, %v326_v41  ;;  %v325_v58 = vld [vmem:[#allocation5 + $0xe0] sm:$0xff]  ;;  %v327_v59 = vld [vmem:[#allocation5 + $0xf0] sm:$0xff]  ;;  %p1087_p12 = pnand %p1086_p3, %p1080_p5 }
  0xa8   : > { %755 = vmatpush1.bf16.msra.mxu0 %v754_v19  ;;  %437 = vmatprep.mubr.f32.mxu0 %v296_v43  ;;  %v454_v46 = vld [vmem:[#allocation8] sm:$0xff]  ;;  %v455_v48 = vld [vmem:[#allocation8 + $0x8] sm:$0xff]  ;;  %v472_v49 = vld [vmem:[#allocation8 + $0x90] sm:$0xff]  ;;  %v774_v3 = vpack.c.bf16 %v327_v59, %v325_v58 }
  0xa9   : > { %757 = vmatprep.subr.bf16.mxu0 %v756_v20  ;;  %v473_v50 = vld [vmem:[#allocation8 + $0x98] sm:$0xff]  ;;  %v810_v52 = vpack.c.bf16 %v455_v48, %v454_v46  ;;  %v456_v54 = vld [vmem:[#allocation8 + $0x10] sm:$0xff]  ;;  %v474_v56 = vld [vmem:[#allocation8 + $0xa0] sm:$0xff]  ;;  %809 = vmatprep.subr.bf16.mxu1 %v808_v47 }
  0xaa   : > { %v812_v53 = vpack.c.bf16 %v473_v50, %v472_v49  ;;  %v457_v55 = vld [vmem:[#allocation8 + $0x18] sm:$0xff]  ;;  %v475_v60 = vld [vmem:[#allocation8 + $0xa8] sm:$0xff]  ;;  %v458_v1 = vld [vmem:[#allocation8 + $0x20] sm:$0xff] }
  0xab   : > { %v330_v61 = vld [vmem:[#allocation5 + $0x108] sm:$0xff]  ;;  %v332_v62 = vld [vmem:[#allocation5 + $0x118] sm:$0xff]  ;;  %811 = vmatpush3.bf16.msra.mxu1 %v810_v52  ;;  %v814_v63 = vpack.c.bf16 %v457_v55, %v456_v54  ;;  %v816_v0 = vpack.c.bf16 %v475_v60, %v474_v56  ;;  %v329_v5 = vld [vmem:[#allocation5 + $0x100] sm:$0xff] }
  0xac   : > { %759 = vmatpush1.bf16.msra.mxu0 %v758_v25  ;;  %813 = vmatprep.subr.bf16.mxu1 %v812_v53  ;;  %v459_v2 = vld [vmem:[#allocation8 + $0x28] sm:$0xff]  ;;  %v776_v4 = vpack.c.bf16 %v332_v62, %v330_v61  ;;  %v336_v8 = vld [vmem:[#allocation5 + $0x138] sm:$0xff]  ;;  %v333_v12 = vld [vmem:[#allocation5 + $0x120] sm:$0xff] }
  0xad   : > { %761 = vmatprep.subr.bf16.mxu0 %v760_v26  ;;  %v331_v6 = vld [vmem:[#allocation5 + $0x110] sm:$0xff]  ;;  %v334_v7 = vld [vmem:[#allocation5 + $0x128] sm:$0xff]  ;;  %v818_v9 = vpack.c.bf16 %v459_v2, %v458_v1  ;;  %v340_v15 = vld [vmem:[#allocation5 + $0x158] sm:$0xff] }
  0xae   : > { %v778_v10 = vpack.c.bf16 %v331_v6, %v329_v5  ;;  %v780_v11 = vpack.c.bf16 %v336_v8, %v334_v7  ;;  %v335_v13 = vld [vmem:[#allocation5 + $0x130] sm:$0xff]  ;;  %v338_v14 = vld [vmem:[#allocation5 + $0x148] sm:$0xff]  ;;  %v337_v18 = vld [vmem:[#allocation5 + $0x140] sm:$0xff] }
  0xaf   : > { %815 = vmatpush3.bf16.msra.mxu1 %v814_v63  ;;  %v782_v16 = vpack.c.bf16 %v335_v13, %v333_v12  ;;  %v784_v17 = vpack.c.bf16 %v340_v15, %v338_v14  ;;  %v339_v19 = vld [vmem:[#allocation5 + $0x150] sm:$0xff]  ;;  %v342_v20 = vld [vmem:[#allocation5 + $0x168] sm:$0xff]  ;;  %v344_v21 = vld [vmem:[#allocation5 + $0x178] sm:$0xff] }
  0xb0   : > { %763 = vmatpush1.bf16.msra.mxu0 %v762_v31  ;;  %817 = vmatprep.subr.bf16.mxu1 %v816_v0  ;;  %v786_v22 = vpack.c.bf16 %v339_v19, %v337_v18  ;;  %v788_v23 = vpack.c.bf16 %v344_v21, %v342_v20  ;;  %v341_v24 = vld [vmem:[#allocation5 + $0x160] sm:$0xff]  ;;  %v343_v25 = vld [vmem:[#allocation5 + $0x170] sm:$0xff]  ;;  %v346_v26 = vld [vmem:[#allocation5 + $0x188] sm:$0xff]  ;;  %v363_v18 = vlaneseq }
  0xb1   : > { %765 = vmatprep.subr.bf16.mxu0 %v764_v32  ;;  %v348_v27 = vld [vmem:[#allocation5 + $0x198] sm:$0xff]  ;;  %v790_v28 = vpack.c.bf16 %v343_v25, %v341_v24  ;;  %v345_v30 = vld [vmem:[#allocation5 + $0x180] sm:$0xff]  ;;  %v347_v31 = vld [vmem:[#allocation5 + $0x190] sm:$0xff] }
  0xb2   : > { %v792_v29 = vpack.c.bf16 %v348_v27, %v346_v26  ;;  %v350_v32 = vld [vmem:[#allocation5 + $0x1a8] sm:$0xff]  ;;  %v352_v33 = vld [vmem:[#allocation5 + $0x1b8] sm:$0xff]  ;;  %v794_v34 = vpack.c.bf16 %v347_v31, %v345_v30  ;;  %v349_v36 = vld [vmem:[#allocation5 + $0x1a0] sm:$0xff]  ;;  %v364_v19 = vshrl.u32 %v363_v18, 7 }
  0xb3   : > { %819 = vmatpush3.bf16.msra.mxu1 %v818_v9  ;;  %v796_v35 = vpack.c.bf16 %v352_v33, %v350_v32  ;;  %v354_v38 = vld [vmem:[#allocation5 + $0x1c8] sm:$0xff]  ;;  %v356_v39 = vld [vmem:[#allocation5 + $0x1d8] sm:$0xff]  ;;  %v353_v42 = vld [vmem:[#allocation5 + $0x1c0] sm:$0xff] }
  0xb4   : > { %767 = vmatpush1.bf16.msra.mxu0 %v766_v37  ;;  %v351_v37 = vld [vmem:[#allocation5 + $0x1b0] sm:$0xff]  ;;  %v800_v41 = vpack.c.bf16 %v356_v39, %v354_v38  ;;  %v358_v44 = vld [vmem:[#allocation5 + $0x1e8] sm:$0xff]  ;;  %v360_v45 = vld [vmem:[#allocation5 + $0x1f8] sm:$0xff]  ;;  %v365_v20 = vsub.s32 0, %v364_v19 }
  0xb5   : > { %769 = vmatprep.subr.bf16.mxu0 %v768_v40  ;;  %v798_v40 = vpack.c.bf16 %v351_v37, %v349_v36  ;;  %v355_v43 = vld [vmem:[#allocation5 + $0x1d0] sm:$0xff]  ;;  %v804_v47 = vpack.c.bf16 %v360_v45, %v358_v44  ;;  %v357_v48 = vld [vmem:[#allocation5 + $0x1e0] sm:$0xff] }
  0xb6   : > { %v802_v46 = vpack.c.bf16 %v355_v43, %v353_v42  ;;  %v359_v49 = vld [vmem:[#allocation5 + $0x1f0] sm:$0xff]  ;;  %v477_v53 = vld [vmem:[#allocation8 + $0xb8] sm:$0xff]  ;;  %v478_v58 = vld [vmem:[#allocation8 + $0xc0] sm:$0xff] }
  0xb7   : > { %v806_v50 = vpack.c.bf16 %v359_v49, %v357_v48  ;;  %v476_v52 = vld [vmem:[#allocation8 + $0xb0] sm:$0xff]  ;;  %v461_v56 = vld [vmem:[#allocation8 + $0x38] sm:$0xff]  ;;  %v479_v59 = vld [vmem:[#allocation8 + $0xc8] sm:$0xff] }
  0xb8   : > { %771 = vmatpush1.bf16.msra.mxu0 %v770_v51  ;;  %v295_v51 = vld [vmem:[%s1409_s14] sm:$0xff]  ;;  %v820_v54 = vpack.c.bf16 %v477_v53, %v476_v52  ;;  %v824_v60 = vpack.c.bf16 %v479_v59, %v478_v58 }
  0xb9   : > { %773 = vmatprep.subr.bf16.mxu0 %v772_v57  ;;  %v460_v55 = vld [vmem:[#allocation8 + $0x30] sm:$0xff]  ;;  %v462_v61 = vld [vmem:[#allocation8 + $0x40] sm:$0xff]  ;;  %v463_v62 = vld [vmem:[#allocation8 + $0x48] sm:$0xff] }
  0xba   : > { %v822_v57 = vpack.c.bf16 %v461_v56, %v460_v55  ;;  %821 = vmatprep.subr.bf16.mxu1 %v820_v54  ;;  %v826_v63 = vpack.c.bf16 %v463_v62, %v462_v61  ;;  %v480_v0 = vld [vmem:[#allocation8 + $0xd0] sm:$0xff]  ;;  %v481_v1 = vld [vmem:[#allocation8 + $0xd8] sm:$0xff]  ;;  %v482_v6 = vld [vmem:[#allocation8 + $0xe0] sm:$0xff] }
  0xbb   : > { %v828_v2 = vpack.c.bf16 %v481_v1, %v480_v0  ;;  %v483_v7 = vld [vmem:[#allocation8 + $0xe8] sm:$0xff]  ;;  %v466_v9 = vld [vmem:[#allocation8 + $0x60] sm:$0xff]  ;;  %v484_v12 = vld [vmem:[#allocation8 + $0xf0] sm:$0xff] }
  0xbc   : > { %775 = vmatpush1.bf16.msra.mxu0 %v774_v3  ;;  %823 = vmatpush3.bf16.msra.mxu1 %v822_v57  ;;  %v464_v3 = vld [vmem:[#allocation8 + $0x50] sm:$0xff]  ;;  %v832_v8 = vpack.c.bf16 %v483_v7, %v482_v6  ;;  %v485_v13 = vld [vmem:[#allocation8 + $0xf8] sm:$0xff] }
  0xbd   : > { %777 = vmatprep.subr.bf16.mxu0 %v776_v4  ;;  %825 = vmatprep.subr.bf16.mxu1 %v824_v60  ;;  %v465_v4 = vld [vmem:[#allocation8 + $0x58] sm:$0xff]  ;;  %v836_v14 = vpack.c.bf16 %v485_v13, %v484_v12  ;;  %v468_v15 = vld [vmem:[#allocation8 + $0x70] sm:$0xff] }
  0xbe   : > { %v830_v5 = vpack.c.bf16 %v465_v4, %v464_v3  ;;  %v361_v21 = vld [vmem:[#allocation7] sm:$0x3] }
  0xc0   : > { %779 = vmatpush1.bf16.msra.mxu0 %v778_v10  ;;  %827 = vmatpush3.bf16.msra.mxu1 %v826_v63  ;;  %v467_v10 = vld [vmem:[#allocation8 + $0x68] sm:$0xff] }
  0xc1   : > { %781 = vmatprep.subr.bf16.mxu0 %v780_v11  ;;  %829 = vmatprep.subr.bf16.mxu1 %v828_v2  ;;  %v834_v11 = vpack.c.bf16 %v467_v10, %v466_v9 }
  0xc4   : > { %783 = vmatpush1.bf16.msra.mxu0 %v782_v16  ;;  %831 = vmatpush3.bf16.msra.mxu1 %v830_v5  ;;  %v469_v16 = vld [vmem:[#allocation8 + $0x78] sm:$0xff] }
  0xc5   : > { %785 = vmatprep.subr.bf16.mxu0 %v784_v17  ;;  %833 = vmatprep.subr.bf16.mxu1 %v832_v8  ;;  %v838_v17 = vpack.c.bf16 %v469_v16, %v468_v15 }
  0xc8   : > { %787 = vmatpush1.bf16.msra.mxu0 %v786_v22  ;;  %835 = vmatpush3.bf16.msra.mxu1 %v834_v11  ;;  %v369_v22 = vsub.s32 1, %v364_v19 }
  0xc9   : > { %789 = vmatprep.subr.bf16.mxu0 %v788_v23  ;;  %837 = vmatprep.subr.bf16.mxu1 %v836_v14  ;;  %v366_v23 = vrot.slane %v361_v21, %v365_v20 }
  0xca   : > { %v370_v24 = vrot.slane %v361_v21, %v369_v22 }
  0xcc   : > { %791 = vmatpush1.bf16.msra.mxu0 %v790_v28  ;;  %839 = vmatpush3.bf16.msra.mxu1 %v838_v17 }
  0xcd   : > { %793 = vmatprep.subr.bf16.mxu0 %v792_v29 }
  0xd0   : > { %795 = vmatpush1.bf16.msra.mxu0 %v794_v34 }
  0xd1   : > { %797 = vmatprep.subr.bf16.mxu0 %v796_v35 }
  0xd4   : > { %799 = vmatpush1.bf16.msra.mxu0 %v798_v40  ;;  %v703_v40 = vld [vmem:[#allocation10] ss:$0 sm:$0xff] }
  0xd5   : > { %801 = vmatprep.subr.bf16.mxu0 %v800_v41 }
  0xd8   : > { %803 = vmatpush1.bf16.msra.mxu0 %v802_v46 }
  0xd9   : > { %805 = vmatprep.subr.bf16.mxu0 %v804_v47 }
  0xdc   : > { %807 = vmatpush1.bf16.msra.mxu0 %v806_v50 }
  0xdf   : > { %438 = vmatmul.mubr.f32.vlgmr.msra.gmra.mrb[0].mxu0 %v295_v51 }
 0x1b2   : > { %v439_v25 = vpop.f32.mrb[0].mxu0 }
 0x1b3   : > { %v440_v26 = vadd.f32 %v439_v25, %v366_v23  ;;  %v441_v27 = vpop.f32.mrb[1].mxu0 }
 0x1b4   : > { %v442_v28 = vadd.f32 %v441_v27, %v370_v24 }
 0x1b5   : > { %v446_v29 = vmul.f32 0.70710677, %v440_v26  ;;  %v444_v36 = vmul.f32 0.5, %v440_v26 }
 0x1b6   : > { %v447_v30 = vmul.f32 0.70710677, %v442_v28  ;;  %v445_v34 = vmul.f32 0.5, %v442_v28 }
 0x1b7   : > { %931 = verf.f32 %v446_v29 }
 0x1b8   : > { %933 = verf.f32 %v447_v30 }
 0x1c1   : > { %v932_v31 = vpop.eup %931 }
 0x1c2   : > { %v934_v32 = vpop.eup %933  ;;  %v450_v33 = vadd.f32 1.0, %v932_v31 }
 0x1c3   : > { %v451_v35 = vadd.f32 1.0, %v934_v32 }
 0x1c4   : > { %v452_v38 = vmul.f32 %v450_v33, %v444_v36 }
 0x1c5   : > { %v453_v37 = vmul.f32 %v451_v35, %v445_v34 }
 0x1c7   : > { %557 = vmatprep.mubr.f32.mxu1 %v453_v37 }
 0x1c8   : > { %558 = vmatmul.mubr.f32.vlgmr.msra.gmra.mrb[0].mxu1 %v452_v38 }
 0x29b   : > { %v741_v39 = vpop.f32.mrb[0].mxu1 }
 0x29c   : > { %v742_v41 = vpop.f32.mrb[1].mxu1 }
 0x29d   : > { %v743_v42 = vadd.f32 %v742_v41, %v741_v39 }
 0x29f   : > { %v560_v43 = vadd.f32 %v743_v42, %v703_v40 }
 0x2a1   : > { %563 = vst [vmem:[%s294_s22] sm:$0xff] %v560_v43 }
 0x2a2   : > { %1090 = shalt.err (!%p1087_p12)
}
 0x2a3   : > { %s1091_s30 = scalar_lea.hbm %s1430_s9, 128  ;;  %s1095_s8 = scalar_lea.hbm %s1479_s5, 256 }
 0x2a4   : > { %p1092_p13 = scmp.ne.s32.totalorder %s1430_s9, %s1091_s30  ;;  %p1096_p9 = scmp.lt.u32.totalorder %s1430_s9, %s1479_s5 }
 0x2a5   : > { %p1097_p4 = scmp.lt.u32.totalorder %s1095_s8, %s1091_s30  ;;  %p1099_p6 = scmp.lt.u32.totalorder %s1091_s30, %s1430_s9 }
 0x2a6   : > { %p1093_p1 = pnand %p1092_p13, %p1497_p0 }
 0x2a7   : > { %p1098_p8 = por %p1097_p4, %p1096_p9 }
 0x2a8   : > { %p1094_p7 = pneg %p1093_p1 }
 0x2a9   : > { %p1100_p2 = por %p1099_p6, %p1098_p8 }
 0x2ab   : > { %p1101_p5 = pnand %p1100_p2, %p1094_p7 }
 0x2ad   : > { %1104 = shalt.err (!%p1101_p5)
}
 0x2ae   : > { %858 = dma.vmem_to_hbm [thread:$0]  (%p1497_p0), %s1432_s26, 128, %s1430_s9, %s565_s15  }
 0x2af PF: > { %s590_s10 = sand.u32 1, %s1139_s18   ;;  %p1498_p10 = scmp.ne.s32.totalorder %s1490_s13, 0 }
 0x2b0   : > { %p1499_p11 = scmp.ge.s32.totalorder %s1151_s21, 2  ;;  %s591_s22 = scalar_lea.sflag [#allocation4], %s590_s10 }
 0x2b2   : > { %p878_p3 = pnand %p1499_p11, %p1498_p10 }
 0x2b4   : > { %1134 = dma.done.wait (!%p878_p3), %s591_s22, 128  }
 0x2b5   : > { %1136 = vsyncadd (!%p878_p3), %s591_s22, 4294967168  ;;  %p20_p12 = scmp.ge.s32.totalorder %s1329_s28, 4   ;;  %s1500_s18 = smov %s1143_s19 }
 0x2b6   : > { %s1501_s19 = smov %s1147_s20  ;;  %s1502_s20 = smov %s1340_s27 }
 0x2b7   : > { %s1503_s21 = smov %s1329_s28  ;;  %22 = sbr.rel (!%p20_p12) target bundleno = 7 (0x7), region = 101 }
 0x2be   :  { %596 = vsyncpa [#allocation3], 1 }
 0x2bf   :  { %598 = vsyncpa [#allocation3 + $0x1], 1 }
 0x2c0   :  { %599 = vsyncpa [#allocation6], 1 }
 0x2c1   :  { %600 = vsyncpa [#allocation9], 1 }
 0x2c2   :  { %601 = vsyncpa [#allocation4], 1 }
 0x2c3   :  { %603 = vsyncpa [#allocation4 + $0x1], 1 }

</bundles_post_ra>
